<compile_context>
chip_gen: v6e
topology: v6e:2x2x1
jax: 0.10.0
libtpu: 0.0.40
codegen_flags: <defaults>
</compile_context>

<pallas_src>
import math
import functools

import jax
import jax.numpy as jnp
import numpy as np
from jax.experimental import pallas as pl
from jax.experimental.pallas import tpu as pltpu


def _round_up(x, n):
    return (x + n - 1) // n * n


def _arcface_kernel(fea_ref, wt_ref, label_ref, out_ref, inv_norm_ref, *,
                    cos_m, sin_m, th, mm, s, easy_margin, tile_c):
    """fea_ref:   [TB, E]  bf16  (L2-normalized features)
       wt_ref:    [E, TC]  bf16  (raw class weight, pre-transposed)
       label_ref: [TB, 1]  i32
       out_ref:   [TB, TC] f32
       inv_norm_ref: (1, TC) f32 VMEM scratch (per-class inverse weight norm)."""
    ci = pl.program_id(0)   # class-tile index (outer; weight block resident)
    bi = pl.program_id(1)   # batch-tile index (inner; fastest-varying)

    # Per-class inverse L2 norm of the (raw bf16) weight columns, computed once
    # per class tile from the VMEM-resident weight block and reused across the
    # whole inner batch sweep (batch axis is "arbitrary" so bi==0 comes first).
    @pl.when(bi == 0)
    def _():
        w = wt_ref[...].astype(jnp.float32)                     # [E, TC]
        ss = jnp.sum(w * w, axis=0, keepdims=True)              # [1, TC]
        inv_norm_ref[...] = jax.lax.rsqrt(jnp.maximum(ss, 1e-24))

    # cosine = fea_n @ w / ||w||: bf16 MXU matmul with f32 accumulation,
    # then a free lane-broadcast column scale (normalization folded in).
    cosine = jnp.dot(fea_ref[...], wt_ref[...],
                     preferred_element_type=jnp.float32) * inv_norm_ref[...]

    # one_hot of the label inside this class tile: compare the column iota
    # against the pre-shifted [TB,1] label (saves a full-tile int add).
    label_local = label_ref[...] - ci * tile_c                  # [TB, 1]
    col = jax.lax.broadcasted_iota(jnp.int32, cosine.shape, 1)  # [TB, TC]
    one_hot = col == label_local

    # Margin math only on the (at most one) label column per row: masked
    # lane-reduce to [TB,1], compute phi there, add the correction back.
    # Rows whose label lies outside this class tile have one_hot all-False,
    # so the (finite) dummy correction is masked out.
    cos_lab = jnp.sum(jnp.where(one_hot, cosine, 0.0),
                      axis=1, keepdims=True)                    # [TB, 1]
    sine_lab = jnp.sqrt(jnp.clip(1.0 - cos_lab * cos_lab, 0.0, 1.0))
    phi_lab = cos_lab * cos_m - sine_lab * sin_m
    if easy_margin:
        phi_lab = jnp.where(cos_lab > 0.0, phi_lab, cos_lab)
    else:
        phi_lab = jnp.where(cos_lab > th, phi_lab, cos_lab - mm)
    delta = phi_lab - cos_lab                                   # [TB, 1]

    out_ref[...] = (cosine + jnp.where(one_hot, delta, 0.0)) * s


def prepare_arcface_weight(weight, *, block_c=1024):
    """One-time (init / optimizer-state) transform of the ArcFace class weight
    into the kernel's streaming layout: [E, C_pad] bf16, classes on the lane
    axis, padded to a multiple of the class tile.  Done once, not per call."""
    C, E = weight.shape
    tc = min(block_c, _round_up(C, 128))
    c_pad = _round_up(C, tc)
    w32 = jnp.pad(weight.astype(jnp.float32), ((0, c_pad - C), (0, 0)))
    return jnp.transpose(w32.astype(jnp.bfloat16))              # [E, C_pad] bf16


def arcface_compute(fea, wt_ec, label, num_class, *, s, m, easy_margin,
                    block_b=256, block_c=1024):
    """Pallas hot path of Arcface.compute().
    fea: [B, E] features, wt_ec: [E, C_pad] bf16 (from prepare_arcface_weight),
    label: [B] int.  Returns [B, num_class] f32 logits."""
    B, E = fea.shape
    E_w, c_pad = wt_ec.shape
    assert E == E_w
    C = num_class
    assert c_pad >= C and c_pad % 128 == 0

    cos_m = math.cos(m)
    sin_m = math.sin(m)
    th = math.cos(math.pi - m)
    mm = math.sin(math.pi - m) * m

    # Feature L2-normalization once per call in f32 (tiny: B x E).
    # F.normalize semantics: x / max(||x||, 1e-12) == x * rsqrt(max(ss, 1e-24)).
    fea32 = fea.astype(jnp.float32)
    fea_n = fea32 * jax.lax.rsqrt(
        jnp.maximum(jnp.sum(fea32 * fea32, axis=1, keepdims=True), 1e-24))

    # Tile sizes: tb multiple of 16 (bf16 sublane packing, MXU-aligned at 256),
    # tc multiple of 128 (lane-dense unmasked stores).
    tb = min(block_b, _round_up(B, 16))
    tc = min(block_c, c_pad)
    assert c_pad % tc == 0, "class padding must match prepare_arcface_weight"
    b_pad = _round_up(B, tb)

    fea_bf = jnp.pad(fea_n, ((0, b_pad - B), (0, 0))).astype(jnp.bfloat16)
    label2d = jnp.pad(label.astype(jnp.int32), (0, b_pad - B)).reshape(b_pad, 1)

    n_ct = c_pad // tc
    n_bt = b_pad // tb
    grid = (n_ct, n_bt)   # class tiles outer, batch tiles inner (fastest)

    kernel = functools.partial(
        _arcface_kernel, cos_m=cos_m, sin_m=sin_m, th=th, mm=mm, s=s,
        easy_margin=easy_margin, tile_c=tc)

    cost = pl.CostEstimate(
        flops=2 * b_pad * c_pad * E + 2 * c_pad * E,
        transcendentals=c_pad + b_pad * n_ct,
        bytes_accessed=(2 * E * c_pad            # weight: single HBM pass
                        + 2 * b_pad * E * n_ct   # features: once per class tile
                        + 4 * b_pad * n_ct       # labels
                        + 4 * b_pad * c_pad))    # f32 logits write

    out = pl.pallas_call(
        kernel,
        out_shape=jax.ShapeDtypeStruct((b_pad, c_pad), jnp.float32),
        grid_spec=pltpu.PrefetchScalarGridSpec(
            num_scalar_prefetch=0,
            grid=grid,
            in_specs=[
                pl.BlockSpec((tb, E), lambda ci, bi: (bi, 0)),   # fea_n  (bf16)
                pl.BlockSpec((E, tc), lambda ci, bi: (0, ci)),   # weight (bf16), resident across bi
                pl.BlockSpec((tb, 1), lambda ci, bi: (bi, 0)),   # labels (i32)
            ],
            out_specs=pl.BlockSpec((tb, tc), lambda ci, bi: (bi, ci)),
            scratch_shapes=[pltpu.VMEM((1, tc), jnp.float32)],   # per-class 1/||w||
        ),
        compiler_params=pltpu.CompilerParams(
            # Class axis split across TensorCores; batch axis sequential so the
            # per-class-tile inv-norm scratch (written at bi==0) stays valid.
            dimension_semantics=("parallel", "arbitrary"),
            vmem_limit_bytes=32 * 1024 * 1024),
        cost_estimate=cost,
    )(fea_bf, wt_ec, label2d)

    return out[:B, :C]


def arcface_forward(label, image, params, *, s, m, easy_margin):
    """Mirrors Arcface.forward(label, image)."""
    B = image.shape[0]
    # TODO(synk): the backbone `model` is user-supplied in the original code;
    # a deterministic flatten+linear stand-in (plain JAX glue) is used here.
    embedd = image.reshape(B, -1).astype(jnp.float32) @ params["w_model"]
    if label is None:
        return embedd
    return arcface_compute(embedd, params["wt_ec"], label, params["num_class"],
                           s=s, m=m, easy_margin=easy_margin)


def _arcface_compute_ref(fea, weight, label, *, s, m, easy_margin):
    """Pure-JAX reference of Arcface.compute(), mirroring the kernel's numeric
    scheme (raw bf16 weight, bf16 features, f32 accumulation, per-class f32
    inverse-norm scale) so the comparison stays tight."""
    fea = fea.astype(jnp.float32)
    fea_n = fea / jnp.maximum(
        jnp.linalg.norm(fea, axis=1, keepdims=True), 1e-12)
    fea_nbf = fea_n.astype(jnp.bfloat16).astype(jnp.float32)
    w_bf = weight.astype(jnp.bfloat16).astype(jnp.float32)
    inv_norm = 1.0 / jnp.maximum(
        jnp.linalg.norm(w_bf, axis=1, keepdims=True), 1e-12)
    cosine = (fea_nbf @ w_bf.T) * inv_norm.T
    sine = jnp.sqrt(jnp.clip(1.0 - cosine ** 2, 0.0, 1.0))
    phi = cosine * math.cos(m) - sine * math.sin(m)
    th = math.cos(math.pi - m)
    mm = math.sin(math.pi - m) * m
    phi = jnp.where(cosine > 0, phi, cosine) if easy_margin else \
        jnp.where(cosine > th, phi, cosine - mm)
    one_hot = jax.nn.one_hot(label, cosine.shape[1], dtype=jnp.float32)
    return (one_hot * phi + (1.0 - one_hot) * cosine) * s


if __name__ == "__main__":
    # Small shapes consistent with the module.
    B, Cc, H, W = 8, 4, 16, 16          # image: NCHW
    emb_size = 64
    num_class = 128
    margin_s, margin_m = 64.0, 0.5
    easy_margin = False

    key = jax.random.PRNGKey(0)
    k_img, k_lbl, k_w, k_m = jax.random.split(key, 4)

    image = jax.random.normal(k_img, (B, Cc, H, W), dtype=jnp.float32)
    label = jax.random.randint(k_lbl, (B,), 0, num_class, dtype=jnp.int32)

    # Arcface weight: [num_class, emb_size], xavier_uniform_ init.
    bound_w = math.sqrt(6.0 / (num_class + emb_size))
    weight = jax.random.uniform(k_w, (num_class, emb_size),
                                minval=-bound_w, maxval=bound_w,
                                dtype=jnp.float32)
    # Stand-in backbone weight: [C*H*W, emb_size].
    in_dim = Cc * H * W
    bound_m = math.sqrt(6.0 / (in_dim + emb_size))
    w_model = jax.random.uniform(k_m, (in_dim, emb_size),
                                 minval=-bound_m, maxval=bound_m,
                                 dtype=jnp.float32)

    params = {
        "wt_ec": prepare_arcface_weight(weight),   # one-time layout transform
        "w_model": w_model,
        "num_class": num_class,
    }

    # label=None path: returns embeddings.
    emb = arcface_forward(None, image, params,
                          s=margin_s, m=margin_m, easy_margin=easy_margin)
    jax.block_until_ready(emb)

    # Full Arcface path via the Pallas kernel.
    out = arcface_forward(label, image, params,
                          s=margin_s, m=margin_m, easy_margin=easy_margin)
    out = jax.block_until_ready(out)

    # Validate against a reference that mirrors the kernel's bf16 inputs and
    # per-class f32 inverse-norm scaling (deliberate bf16 cosine rounding vs
    # the pure-f32 PyTorch path is documented and small).
    fea = image.reshape(B, -1) @ w_model
    ref = _arcface_compute_ref(fea, weight, label,
                               s=margin_s, m=margin_m,
                               easy_margin=easy_margin)
    np.testing.assert_allclose(np.asarray(out), np.asarray(ref),
                               rtol=1e-3, atol=1e-2)

    print("KERNEL_OK")
</pallas_src>

<mosaic_0001>
module attributes {stable_mosaic.version = 11 : i64} {
  func.func @_arcface_kernel(%arg0: i32, %arg1: i32, %arg2: memref<16x64xbf16, #tpu.memory_space<vmem>>, %arg3: memref<64x128xbf16, #tpu.memory_space<vmem>>, %arg4: memref<16x1xi32, #tpu.memory_space<vmem>>, %arg5: memref<16x128xf32, #tpu.memory_space<vmem>>, %arg6: memref<1x128xf32, #tpu.memory_space<vmem>>) attributes {dimension_semantics = [#tpu.dimension_semantics<parallel>, #tpu.dimension_semantics<arbitrary>], iteration_bounds = array<i64: 1, 1>, scalar_prefetch = 0 : i64, scratch_operands = 1 : i64, tpu.core_type = #tpu.core_type<tc>, window_params = [{transform_indices = @transform_0, window_bounds = array<i64: 16, 64>}, {transform_indices = @transform_1, window_bounds = array<i64: 64, 128>}, {transform_indices = @transform_2, window_bounds = array<i64: 16, 1>}, {transform_indices = @transform_3, window_bounds = array<i64: 16, 128>}]} {
    %c0_i32 = arith.constant 0 : i32
    %0 = arith.cmpi eq, %arg1, %c0_i32 : i32
    %1 = arith.extui %0 : i1 to i32
    %c0_i32_0 = arith.constant 0 : i32
    %2 = arith.cmpi ne, %1, %c0_i32_0 : i32
    scf.if %2 {
      %c0_21 = arith.constant 0 : index
      %c0_22 = arith.constant 0 : index
      %47 = vector.load %arg3[%c0_21, %c0_22] : memref<64x128xbf16, #tpu.memory_space<vmem>>, vector<64x128xbf16>
      %48 = arith.extf %47 : vector<64x128xbf16> to vector<64x128xf32>
      %49 = arith.mulf %48, %48 : vector<64x128xf32>
      %cst_23 = arith.constant dense<0.000000e+00> : vector<128xf32>
      %50 = vector.multi_reduction <add>, %49, %cst_23 [0] : vector<64x128xf32> to vector<128xf32>
      %51 = vector.shape_cast %50 : vector<128xf32> to vector<1x128xf32>
      %cst_24 = arith.constant 1.000000e-24 : f32
      %52 = vector.broadcast %cst_24 : f32 to vector<1x128xf32>
      %53 = arith.maximumf %51, %52 : vector<1x128xf32>
      %54 = math.rsqrt %53 : vector<1x128xf32>
      %c0_25 = arith.constant 0 : index
      %c0_26 = arith.constant 0 : index
      %55 = vector.load %arg6[%c0_25, %c0_26] : memref<1x128xf32, #tpu.memory_space<vmem>>, vector<1x128xf32>
      tpu.vector_store %arg6[%c0_25, %c0_26], %54 {strides = array<i32>} : memref<1x128xf32, #tpu.memory_space<vmem>>, vector<1x128xf32>,
    } else {
    }
    %c0 = arith.constant 0 : index
    %c0_1 = arith.constant 0 : index
    %3 = vector.load %arg2[%c0, %c0_1] : memref<16x64xbf16, #tpu.memory_space<vmem>>, vector<16x64xbf16>
    %c0_2 = arith.constant 0 : index
    %c0_3 = arith.constant 0 : index
    %4 = vector.load %arg3[%c0_2, %c0_3] : memref<64x128xbf16, #tpu.memory_space<vmem>>, vector<64x128xbf16>
    %cst = arith.constant dense<0.000000e+00> : vector<16x128xf32>
    %5 = tpu.matmul %3, %4, %cst {dimension_numbers = #tpu.dot_dimension_numbers<[1], [0], [0], [1], [0, 0, 1, 1], [], []>} : vector<16x64xbf16>, vector<64x128xbf16>, vector<16x128xf32> -> vector<16x128xf32>
    %c0_4 = arith.constant 0 : index
    %c0_5 = arith.constant 0 : index
    %6 = vector.load %arg6[%c0_4, %c0_5] : memref<1x128xf32, #tpu.memory_space<vmem>>, vector<1x128xf32>
    %7 = vector.broadcast %6 : vector<1x128xf32> to vector<16x128xf32>
    %8 = arith.mulf %5, %7 : vector<16x128xf32>
    %c0_6 = arith.constant 0 : index
    %c0_7 = arith.constant 0 : index
    %9 = vector.load %arg4[%c0_6, %c0_7] : memref<16x1xi32, #tpu.memory_space<vmem>>, vector<16x1xi32>
    %c128_i32 = arith.constant 128 : i32
    %10 = arith.muli %arg0, %c128_i32 : i32
    %11 = vector.broadcast %10 : i32 to vector<16x1xi32>
    %12 = arith.subi %9, %11 : vector<16x1xi32>
    %13 = tpu.iota {dimensions = array<i32: 1>} : vector<16x128xi32>
    %14 = vector.broadcast %12 : vector<16x1xi32> to vector<16x128xi32>
    %15 = arith.cmpi eq, %13, %14 : vector<16x128xi32>
    %cst_8 = arith.constant 0.000000e+00 : f32
    %16 = vector.broadcast %cst_8 : f32 to vector<16x128xf32>
    %17 = arith.select %15, %8, %16 : vector<16x128xi1>, vector<16x128xf32>
    %cst_9 = arith.constant dense<0.000000e+00> : vector<16xf32>
    %18 = vector.multi_reduction <add>, %17, %cst_9 [1] : vector<16x128xf32> to vector<16xf32>
    %19 = vector.shape_cast %18 : vector<16xf32> to vector<16x1xf32>
    %20 = arith.mulf %19, %19 : vector<16x1xf32>
    %cst_10 = arith.constant 1.000000e+00 : f32
    %21 = vector.broadcast %cst_10 : f32 to vector<16x1xf32>
    %22 = arith.subf %21, %20 : vector<16x1xf32>
    %cst_11 = arith.constant 0.000000e+00 : f32
    %cst_12 = arith.constant 1.000000e+00 : f32
    %23 = vector.broadcast %cst_11 : f32 to vector<16x1xf32>
    %24 = arith.maximumf %23, %22 : vector<16x1xf32>
    %25 = vector.broadcast %cst_12 : f32 to vector<16x1xf32>
    %26 = arith.minimumf %25, %24 : vector<16x1xf32>
    %27 = math.sqrt %26 : vector<16x1xf32>
    %cst_13 = arith.constant 0.87758255 : f32
    %28 = vector.broadcast %cst_13 : f32 to vector<16x1xf32>
    %29 = arith.mulf %19, %28 : vector<16x1xf32>
    %cst_14 = arith.constant 0.47942555 : f32
    %30 = vector.broadcast %cst_14 : f32 to vector<16x1xf32>
    %31 = arith.mulf %27, %30 : vector<16x1xf32>
    %32 = arith.subf %29, %31 : vector<16x1xf32>
    %cst_15 = arith.constant -0.87758255 : f32
    %33 = vector.broadcast %cst_15 : f32 to vector<16x1xf32>
    %34 = arith.cmpf ogt, %19, %33 : vector<16x1xf32>
    %cst_16 = arith.constant 0.239712775 : f32
    %35 = vector.broadcast %cst_16 : f32 to vector<16x1xf32>
    %36 = arith.subf %19, %35 : vector<16x1xf32>
    %37 = arith.select %34, %32, %36 : vector<16x1xi1>, vector<16x1xf32>
    %38 = arith.subf %37, %19 : vector<16x1xf32>
    %cst_17 = arith.constant 0.000000e+00 : f32
    %39 = vector.shape_cast %38 : vector<16x1xf32> to vector<16x1xf32>
    %40 = vector.broadcast %39 : vector<16x1xf32> to vector<16x128xf32>
    %41 = vector.broadcast %cst_17 : f32 to vector<16x128xf32>
    %42 = arith.select %15, %40, %41 : vector<16x128xi1>, vector<16x128xf32>
    %43 = arith.addf %8, %42 : vector<16x128xf32>
    %cst_18 = arith.constant 6.400000e+01 : f32
    %44 = vector.broadcast %cst_18 : f32 to vector<16x128xf32>
    %45 = arith.mulf %43, %44 : vector<16x128xf32>
    %c0_19 = arith.constant 0 : index
    %c0_20 = arith.constant 0 : index
    %46 = vector.load %arg5[%c0_19, %c0_20] : memref<16x128xf32, #tpu.memory_space<vmem>>, vector<16x128xf32>
    tpu.vector_store %arg5[%c0_19, %c0_20], %45 {strides = array<i32>} : memref<16x128xf32, #tpu.memory_space<vmem>>, vector<16x128xf32>,
    return
  }
  func.func @transform_0(%arg0: i32, %arg1: i32) -> (i32, i32) {
    %c0_i32 = arith.constant 0 : i32
    %c0_i32_0 = arith.constant 0 : i32
    return %arg1, %c0_i32 : i32, i32
  }
  func.func @transform_1(%arg0: i32, %arg1: i32) -> (i32, i32) {
    %c0_i32 = arith.constant 0 : i32
    %c0_i32_0 = arith.constant 0 : i32
    return %c0_i32, %arg0 : i32, i32
  }
  func.func @transform_2(%arg0: i32, %arg1: i32) -> (i32, i32) {
    %c0_i32 = arith.constant 0 : i32
    %c0_i32_0 = arith.constant 0 : i32
    return %arg1, %c0_i32 : i32, i32
  }
  func.func @transform_3(%arg0: i32, %arg1: i32) -> (i32, i32) {
    %c0_i32 = arith.constant 0 : i32
    return %arg1, %arg0 : i32, i32
  }
}

</mosaic_0001>

<bundles_post_ra>
// kernel: tpu_custom_call.1
= control target key start
LH: loop header
LB: loop body
LE: loop exit
PB: predicated region body
PF: predicated region fallthrough
CT: control target
= control target key end

     0   :  { %8 = vsyncpa [#allocation4], 0  ;;  %s408_s0 = inlined_call_operand.vmem [shape: bf16[16,64], index: 0, kind: input, shape index: {}]   ;;  %s409_s1 = inlined_call_operand.hbm [shape: bf16[64,128], index: 1, kind: input, shape index: {}]   ;;  %s410_s2 = inlined_call_operand.vmem [shape: s32[16,1], index: 2, kind: input, shape index: {}]   ;;  %s411_s3 = inlined_call_operand.hbm [shape: f32[16,128], index: 3, kind: output, shape index: {}]  }
   0x1   :  { %9 = vsyncpa [#allocation5], 0  ;;  %s360_s12 = smov [#allocation3]  }
   0x2   :  { %s17_s13 = sshll.u32 %s360_s12, 4  ;;  %s18_s13 = int_to_ptr.vmem [resolvable:$true] %s17_s13 }
   0x3   :  { %s324_s14 = scalar_lea.vmem %s18_s13, 512  ;;  %p329_p1 = scmp.lt.s32.totalorder %s18_s13, %s18_s13 }
   0x4   :  { %p325_p0 = scmp.ne.s32.totalorder %s18_s13, %s324_s14  ;;  %p330_p2 = scmp.lt.s32.totalorder %s324_s14, %s324_s14 }
   0x6   :  { %p331_p3 = por %p330_p2, %p329_p1 }
   0x8   :  { %p332_p4 = pnand %p331_p3, %p325_p0 }
   0xa   :  { %335 = shalt.err (!%p332_p4)
}
   0xb   :  { %s361_s15 = smov 64   ;;  %s362_s16 = smov 4  }
   0xc   :  { %23 = dma.hbm_to_vmem [thread:$0]  %s409_s1, 512, %s18_s13, [#allocation4], %s361_s15, %s361_s15, %s362_s16  }
   0xd   :  { %356 = dma.done.wait [#allocation4], 512  }
   0xe   :  { %357 = vsyncadd [#allocation4], 4294966784  ;;  %v363_v0 = vmov 0.0   ;;  %vm364_vm0 = vmmov 0   ;;  %v365_v1 = vmov 0   ;;  %v305_v2 = vld [vmem:[#allocation3 + $0x18] sm:$0xff]   ;;  %v173_v44 = vlaneseq }
   0xf   :  { %283 = vmatprep.subr.bf16.mxu0 %v363_v0  ;;  %291 = vmatprep.mubr.msk.bf16.mxu0 %vm364_vm0, %v363_v0  ;;  %v306_v3 = vld [vmem:[#allocation3 + $0x10] sm:$0xff]   ;;  %v167_v4 = vld [vmem:[%s410_s2] sm:$0xff]  ;;  %v307_v6 = vld [vmem:[#allocation3 + $0x8] sm:$0xff]   ;;  %vm113_vm1 = vcmask 523264  }
  0x10   :  { %304 = vset.pattern.permute.xlu0 %v365_v1  ;;  %284 = vmatpush3.bf16.msra.mxu0 %v305_v2  ;;  %v260_v5 = vld [vmem:[#allocation3] sm:$0xff]   ;;  %v275_v9 = vld [vmem:[#allocation3 + $0x8] sm:$0xff]   ;;  %v276_v10 = vld [vmem:[#allocation3 + $0x10] sm:$0xff]   ;;  %v174_v45 = vand.u32 127, %v173_v44 }
  0x11   :  { %285 = vmatprep.subr.bf16.mxu0 %v363_v0  ;;  %176 = vperm.xlu0 %304, %v167_v4   ;;  %v261_v7 = vunpack.c.l.bf16 %v260_v5  ;;  %v262_v8 = vunpack.c.h.bf16 %v260_v5  ;;  %v168_v11 = vld [vmem:[%s410_s2 + $0x8] sm:$0xff]  ;;  %v265_v12 = vunpack.c.l.bf16 %v275_v9  ;;  %v266_v13 = vunpack.c.h.bf16 %v275_v9  ;;  %v277_v17 = vld [vmem:[#allocation3 + $0x18] sm:$0xff]  }
  0x12   :  { %v269_v14 = vunpack.c.l.bf16 %v276_v10  ;;  %v308_v19 = vld [vmem:[#allocation3] sm:$0xff]   ;;  %v270_v20 = vunpack.c.h.bf16 %v276_v10  ;;  %v273_v23 = vunpack.c.l.bf16 %v277_v17  ;;  %v274_v27 = vunpack.c.h.bf16 %v277_v17 }
  0x13   :  { %v50_v15 = vmul.f32 %v261_v7, %v261_v7  ;;  %v51_v16 = vmul.f32 %v262_v8, %v262_v8  ;;  %v52_v18 = vmul.f32 %v265_v12, %v265_v12  ;;  %v53_v21 = vmul.f32 %v266_v13, %v266_v13  ;;  %v309_v26 = vld [vmem:[%s408_s0] sm:$0xff]   ;;  %s366_s0 = smov [#allocation6]  }
  0x14   :  { %286 = vmatpush3.bf16.msra.mxu0 %v306_v3  ;;  %v54_v24 = vmul.f32 %v269_v14, %v269_v14  ;;  %v55_v28 = vmul.f32 %v270_v20, %v270_v20  ;;  %v56_v30 = vmul.f32 %v273_v23, %v273_v23  ;;  %v57_v32 = vmul.f32 %v274_v27, %v274_v27  ;;  %s238_s2 = sshll.u32 %s366_s0, 4  ;;  %s239_s2 = int_to_ptr.vmem [resolvable:$true] %s238_s2 }
  0x15   :  { %287 = vmatprep.subr.bf16.mxu0 %v363_v0  ;;  %179 = vperm.xlu0 %304, %v168_v11   ;;  %v58_v22 = vadd.f32 %v51_v16, %v50_v15  ;;  %s336_s24 = scalar_lea.vmem %s239_s2, 256  ;;  %p341_p6 = scmp.lt.s32.totalorder %s239_s2, %s239_s2 }
  0x16   :  { %p337_p5 = scmp.ne.s32.totalorder %s239_s2, %s336_s24  ;;  %p342_p7 = scmp.lt.s32.totalorder %s336_s24, %s336_s24 }
  0x17   :  { %v59_v25 = vadd.f32 %v58_v22, %v52_v18 }
  0x18   :  { %288 = vmatpush3.bf16.msra.mxu0 %v307_v6  ;;  %p343_p8 = por %p342_p7, %p341_p6 }
  0x19   :  { %289 = vmatprep.subr.bf16.mxu0 %v363_v0  ;;  %v60_v29 = vadd.f32 %v59_v25, %v53_v21 }
  0x1a   :  { %p344_p9 = pnand %p343_p8, %p337_p5 }
  0x1b   :  { %v61_v31 = vadd.f32 %v60_v29, %v54_v24 }
  0x1c   :  { %290 = vmatpush3.bf16.msra.mxu0 %v308_v19 }
  0x1d   :  { %v62_v33 = vadd.f32 %v61_v31, %v55_v28 }
  0x1f   :  { %292 = vmatmul.mubr.msk.bf16.vlgmr.msra.gmra.mxu0 %vm113_vm1, %v309_v26  ;;  %v63_v34 = vadd.f32 %v62_v33, %v56_v30 }
  0x21   :  { %v64_v35 = vadd.f32 %v63_v34, %v57_v32 }
  0x23   :  { %v65_v36 = vrot.slane %v64_v35, 4 }
  0x25   :  { %v66_v37 = vadd.f32 %v65_v36, %v64_v35 }
  0x27   :  { %v67_v38 = vrot.slane %v66_v37, 2 }
  0x29   :  { %v68_v39 = vadd.f32 %v67_v38, %v66_v37 }
  0x2b   :  { %v69_v40 = vrot.slane %v68_v39, 1 }
  0x2d   :  { %v70_v41 = vadd.f32 %v69_v40, %v68_v39 }
  0x2f   :  { %v71_v42 = vmax.f32 %v70_v41, 1e-24 }
  0x31   :  { %310 = vrsqrt.f32 %v71_v42 }
  0x3e   :  { %v311_v43 = vpop.eup %310 }
  0x3f   :  { %73 = vst [vmem:[#allocation2] sm:$0x1] %v311_v43 }
  0x46   :  { %v256_v47 = vld [vmem:[#allocation2] ss:$0 sm:$0xff] }
  0x8c   :  { %v177_v46 = vpop.permute.xlu0 %176 }
  0x8d   :  { %vm181_vm2 = vcmp.eq.s32.totalorder %v174_v45, %v177_v46 }
  0x90   :  { %v180_v51 = vpop.permute.xlu0 %179 }
  0x91   :  { %vm182_vm3 = vcmp.eq.s32.totalorder %v174_v45, %v180_v51 }
  0xdf   :  { %v151_v48 = vpop.f32.mrf.mxu0 }
  0xe0   :  { %v165_v49 = vmul.f32 %v256_v47, %v151_v48 }
  0xe1   :  { %v293_v50 = vpop.f32.mrf.mxu0 }
  0xe2   :  { %v183_v52 = vsel %vm181_vm2, %v165_v49, 0.0 }
  0xe3   :  { %v154_v53 = vpop.f32.mrf.mxu0  ;;  %185 = vadd.xlane.f32.xlu1 %v183_v52 }
  0xe4   :  { %v166_v54 = vmul.f32 %v256_v47, %v154_v53 }
  0xe5   :  { %v294_v55 = vpop.f32.mrf.mxu0 }
  0xe6   :  { %v184_v56 = vsel %vm182_vm3, %v166_v54, 0.0 }
  0xe7   :  { %187 = vadd.xlane.f32.xlu1 %v184_v56 }
 0x16c   :  { %v186_v57 = vpop.xlane.xlu1 %185 }
 0x16d   :  { %v189_v58 = vmul.f32 %v186_v57, %v186_v57  ;;  %v211_v9 = vmul.f32 0.87758255, %v186_v57  ;;  %v257_v13 = vadd.f32 -0.23971277, %v186_v57  ;;  %vm217_vm7 = vcmp.gt.f32.partialorder %v186_v57, -0.87758255 }
 0x16f   :  { %v191_v59 = vsub.f32 1.0, %v189_v58 }
 0x170   :  { %v188_v60 = vpop.xlane.xlu1 %187 }
 0x171   :  { %v193_v61 = vmax.f32 %v191_v59, 0.0  ;;  %v190_v62 = vmul.f32 %v188_v60, %v188_v60  ;;  %v212_v19 = vmul.f32 0.87758255, %v188_v60  ;;  %v258_v23 = vadd.f32 -0.23971277, %v188_v60 }
 0x172   :  { %vm218_vm9 = vcmp.gt.f32.partialorder %v188_v60, -0.87758255 }
 0x173   :  { %v195_v63 = vmin.f32 %v193_v61, 1.0  ;;  %v192_v0 = vsub.f32 1.0, %v190_v62 }
 0x175   :  { %312 = vrsqrt.f32 %v195_v63  ;;  %v194_v1 = vmax.f32 %v192_v0, 0.0  ;;  %vm199_vm4 = vcmp.eq.f32.partialorder %v195_v63, inf  ;;  %v202_v5 = vand.u32 2147483648, %v195_v63 }
 0x176   :  { %vm201_vm5 = vcmp.eq.f32.partialorder %v195_v63, 0.0 }
 0x177   :  { %v196_v2 = vmin.f32 %v194_v1, 1.0 }
 0x179   :  { %314 = vrsqrt.f32 %v196_v2  ;;  %vm206_vm6 = vcmp.eq.f32.partialorder %v196_v2, inf  ;;  %v209_v14 = vand.u32 2147483648, %v196_v2  ;;  %vm208_vm8 = vcmp.eq.f32.partialorder %v196_v2, 0.0 }
 0x182   :  { %v313_v3 = vpop.eup %312 }
 0x183   :  { %v198_v4 = vmul.f32 %v313_v3, %v195_v63 }
 0x185   :  { %v200_v6 = vsel %vm199_vm4, %v195_v63, %v198_v4 }
 0x186   :  { %v203_v7 = vsel %vm201_vm5, %v202_v5, %v200_v6  ;;  %v315_v8 = vpop.eup %314 }
 0x187   :  { %v213_v10 = vmul.f32 0.47942555, %v203_v7  ;;  %v205_v11 = vmul.f32 %v315_v8, %v196_v2 }
 0x189   :  { %v215_v12 = vsub.f32 %v211_v9, %v213_v10  ;;  %v207_v15 = vsel %vm206_vm6, %v196_v2, %v205_v11 }
 0x18a   :  { %v210_v17 = vsel %vm208_vm8, %v209_v14, %v207_v15 }
 0x18b   :  { %v221_v16 = vsel %vm217_vm7, %v215_v12, %v257_v13  ;;  %v214_v20 = vmul.f32 0.47942555, %v210_v17 }
 0x18c   :  { %v223_v18 = vsub.f32 %v221_v16, %v186_v57 }
 0x18d   :  { %v216_v22 = vsub.f32 %v212_v19, %v214_v20 }
 0x18e   :  { %v225_v21 = vsel %vm181_vm2, %v223_v18, 0.0 }
 0x18f   :  { %v227_v24 = vadd.f32 %v225_v21, %v165_v49  ;;  %v222_v25 = vsel %vm218_vm9, %v216_v22, %v258_v23 }
 0x190   :  { %v224_v26 = vsub.f32 %v222_v25, %v188_v60 }
 0x191   :  { %v229_v27 = vmul.f32 64.0, %v227_v24 }
 0x192   :  { %v226_v28 = vsel %vm182_vm3, %v224_v26, 0.0 }
 0x193   :  { %231 = vst [vmem:[#allocation6] sm:$0xff] %v229_v27  ;;  %v228_v29 = vadd.f32 %v226_v28, %v166_v54 }
 0x195   :  { %v230_v30 = vmul.f32 64.0, %v228_v29 }
 0x197   :  { %232 = vst [vmem:[#allocation6 + $0x8] sm:$0xff] %v230_v30 }
 0x198   :  { %347 = shalt.err (!%p344_p9)
}
 0x199   :  { %s367_s25 = smov 128   ;;  %s368_s26 = smov 8  }
 0x19a   :  { %244 = dma.vmem_to_hbm [thread:$0]  %s239_s2, 256, %s411_s3, [#allocation5], %s367_s25, %s367_s25, %s368_s26  }
 0x19b   :  { %358 = dma.done.wait [#allocation5], 256  }
 0x19c   :  { %359 = vsyncadd [#allocation5], 4294967040 }
 0x19d   :  { %248 = vsyncpa [#allocation4], 1 }
 0x19e   :  { %249 = vsyncpa [#allocation5], 1 }

</bundles_post_ra>
